<compile_context>
chip_gen: v7x
topology: tpu7x:2x2x1
jax: 0.10.0
libtpu: 0.0.40
codegen_flags: <defaults>
</compile_context>

<pallas_src>
import jax
import jax.numpy as jnp
import numpy as np
from jax.experimental import pallas as pl
from jax.experimental.pallas import tpu as pltpu

NUM_FEATURES = 3
NUM_HIDDEN = 100
NUM_OUTPUT = 1
HID_PAD = 128           # hidden dim padded to one full lane tile
IN_PAD = 8              # input dim padded to one sublane tile (3 feats + 1 bias row + 4 zero)
TILE_B_MAX = 4096       # max batch tile (multiple of 128)


def _use_bf16_epilogue():
    """bf16 packed VALU exists on v6e / v7x; keep the epilogue in f32 elsewhere."""
    try:
        kind = jax.devices()[0].device_kind.lower()
    except Exception:
        return True
    return any(s in kind for s in ("v6", "v7", "tpu7"))


def _make_kernel(bf16_epilogue):
    def _bias_relu(acc_f32, b_ref):
        if bf16_epilogue:
            v = acc_f32.astype(jnp.bfloat16) + b_ref[...]       # packed bf16 add
            return jnp.maximum(v, 0.0)                           # packed bf16 relu
        v = acc_f32 + b_ref[...]                                  # f32 add (v5e path)
        return jnp.maximum(v, 0.0).astype(jnp.bfloat16)

    def kernel(xT_ref,                 # (IN_PAD, TB)  bf16, row 3 == 1.0 (bias fold)
               w1_ref,                 # (128, IN_PAD) bf16, column 3 == b1
               w2_ref, b2_ref,         # (128, 128) bf16, (128, 1) epilogue dtype
               w3_ref, b3_ref,
               w4_ref, b4_ref,         # (128, 1) f32, (1, 1) f32
               o_ref):                 # (1, TB) f32
        # ---- layer 1 (3 -> 128) on the MXU, bias folded via the ones row ----
        h = jnp.dot(w1_ref[...], xT_ref[...], preferred_element_type=jnp.float32)
        if bf16_epilogue:
            h = jnp.maximum(h.astype(jnp.bfloat16), 0.0)
        else:
            h = jnp.maximum(h, 0.0).astype(jnp.bfloat16)

        # ---- layer 2 (128 -> 128) on the MXU, f32 accumulation ----
        h = _bias_relu(jnp.dot(w2_ref[...], h, preferred_element_type=jnp.float32),
                       b2_ref)

        # ---- layer 3 (128 -> 128) on the MXU ----
        h = _bias_relu(jnp.dot(w3_ref[...], h, preferred_element_type=jnp.float32),
                       b3_ref)

        # ---- layer 4 (128 -> 1): VPU multiply + cross-sublane reduce ----
        y = jnp.sum(h.astype(jnp.float32) * w4_ref[...], axis=0, keepdims=True)
        y = y + b4_ref[...]                                       # (1, TB) f32

        # sigmoid: exp + reciprocal both live on the EUP slot
        o_ref[...] = pl.reciprocal(1.0 + jnp.exp(-y), approx=True)

    return kernel


def _choose_tile_b(batch, tile_b_max=TILE_B_MAX):
    """Pick a batch tile: small tile for tiny batches, >=2 tiles for medium
    batches (v7x 2-TC sharding), capped at tile_b_max for large batches."""
    b128 = max(128, ((batch + 127) // 128) * 128)
    if b128 > tile_b_max:
        return tile_b_max
    if b128 >= 1024:
        half = ((b128 // 2) + 127) // 128 * 128
        return min(half, tile_b_max)
    return b128


def _pad2d(a, rows, cols, dtype):
    out = jnp.zeros((rows, cols), dtype)
    return out.at[:a.shape[0], :a.shape[1]].set(a.astype(dtype))


def torcs_mlp_acc_forward(x, params, *, tile_b=None):
    """x: (B, NUM_FEATURES) float32.  params: PyTorch layout w (out,in), b (out,)."""
    B = x.shape[0]
    if tile_b is None:
        tile_b = _choose_tile_b(B)
    assert tile_b % 128 == 0
    num_tiles = pl.cdiv(B, tile_b)
    b_pad = num_tiles * tile_b

    bf16_epi = _use_bf16_epilogue()
    bias_dt = jnp.bfloat16 if bf16_epi else jnp.float32

    # Transposed, padded activations: rows 0..2 = features, row 3 = 1.0 (bias fold).
    xT8 = jnp.zeros((IN_PAD, b_pad), jnp.bfloat16)
    xT8 = xT8.at[:NUM_FEATURES, :B].set(x.T.astype(jnp.bfloat16))
    xT8 = xT8.at[NUM_FEATURES, :].set(jnp.bfloat16(1.0))

    # W1 padded to (128, 8) with b1 folded into column 3.
    w1p = jnp.zeros((HID_PAD, IN_PAD), jnp.bfloat16)
    w1p = w1p.at[:NUM_HIDDEN, :NUM_FEATURES].set(params["w1"].astype(jnp.bfloat16))
    w1p = w1p.at[:NUM_HIDDEN, NUM_FEATURES].set(params["b1"].astype(jnp.bfloat16))

    w2p = _pad2d(params["w2"], HID_PAD, HID_PAD, jnp.bfloat16)
    b2p = _pad2d(params["b2"].reshape(-1, 1), HID_PAD, 1, bias_dt)
    w3p = _pad2d(params["w3"], HID_PAD, HID_PAD, jnp.bfloat16)
    b3p = _pad2d(params["b3"].reshape(-1, 1), HID_PAD, 1, bias_dt)
    w4p = _pad2d(params["w4"].T, HID_PAD, 1, jnp.float32)
    b4p = params["b4"].reshape(1, 1).astype(jnp.float32)

    const = lambda a: pl.BlockSpec(a.shape, lambda i: (0,) * a.ndim)

    # Advisory cost for XLA scheduling around the custom call.
    flops = 2 * b_pad * (HID_PAD * IN_PAD + 2 * HID_PAD * HID_PAD + HID_PAD)
    bytes_accessed = int(
        xT8.size * 2 + b_pad * 4                       # x in, y out
        + (w1p.size + w2p.size + w3p.size) * 2         # bf16 weights
        + (b2p.size + b3p.size) * b2p.dtype.itemsize
        + (w4p.size + b4p.size) * 4)
    cost = pl.CostEstimate(flops=flops, transcendentals=b_pad,
                           bytes_accessed=bytes_accessed)

    out = pl.pallas_call(
        _make_kernel(bf16_epi),
        out_shape=jax.ShapeDtypeStruct((1, b_pad), jnp.float32),
        grid=(num_tiles,),
        in_specs=[
            pl.BlockSpec((IN_PAD, tile_b), lambda i: (0, i)),   # x tile
            const(w1p),
            const(w2p), const(b2p),
            const(w3p), const(b3p),
            const(w4p), const(b4p),
        ],
        out_specs=pl.BlockSpec((1, tile_b), lambda i: (0, i)),
        compiler_params=pltpu.CompilerParams(
            dimension_semantics=("parallel",),
            vmem_limit_bytes=32 * 1024 * 1024),
        cost_estimate=cost,
    )(xT8, w1p, w2p, b2p, w3p, b3p, w4p, b4p)

    # (1, B_pad) lane-dense result -> (B, 1) like the PyTorch module.
    return out[:, :B].T


def init_params(key):
    """PyTorch nn.Linear layout: weight (out, in), bias (out,), U[-1/sqrt(fan_in), +...]."""
    dims = [(NUM_FEATURES, NUM_HIDDEN),
            (NUM_HIDDEN, NUM_HIDDEN),
            (NUM_HIDDEN, NUM_HIDDEN),
            (NUM_HIDDEN, NUM_OUTPUT)]
    params = {}
    for i, (fan_in, fan_out) in enumerate(dims, start=1):
        key, kw, kb = jax.random.split(key, 3)
        bound = 1.0 / np.sqrt(fan_in)
        params[f"w{i}"] = jax.random.uniform(
            kw, (fan_out, fan_in), jnp.float32, -bound, bound)
        params[f"b{i}"] = jax.random.uniform(
            kb, (fan_out,), jnp.float32, -bound, bound)
    return params


def reference_forward(x, params):
    h = jnp.maximum(x @ params["w1"].T + params["b1"], 0.0)
    h = jnp.maximum(h @ params["w2"].T + params["b2"], 0.0)
    h = jnp.maximum(h @ params["w3"].T + params["b3"], 0.0)
    return jax.nn.sigmoid(h @ params["w4"].T + params["b4"])


if __name__ == "__main__":
    key = jax.random.PRNGKey(0)
    key, kx = jax.random.split(key)
    params = init_params(key)

    # Small batch (pads to a single 128 tile) and a medium batch (>=2 tiles,
    # exercising the multi-tile / megacore path).
    for batch in (8, 1000):
        kx, sub = jax.random.split(kx)
        x = jax.random.normal(sub, (batch, NUM_FEATURES), jnp.float32)

        out = jax.block_until_ready(torcs_mlp_acc_forward(x, params))
        ref = reference_forward(x, params)
        # bf16 MXU operands (f32 accumulation) -> small, intentional deviation vs f32 ref
        np.testing.assert_allclose(np.asarray(out), np.asarray(ref),
                                   rtol=2e-2, atol=2e-2)
        assert out.shape == (batch, NUM_OUTPUT)

    print("KERNEL_OK")
</pallas_src>

<mosaic_0001>
module attributes {stable_mosaic.version = 11 : i64} {
  func.func @kernel(%arg0: i32, %arg1: memref<8x128xbf16, #tpu.memory_space<vmem>>, %arg2: memref<128x8xbf16, #tpu.memory_space<vmem>>, %arg3: memref<128x128xbf16, #tpu.memory_space<vmem>>, %arg4: memref<128x1xf32, #tpu.memory_space<vmem>>, %arg5: memref<128x128xbf16, #tpu.memory_space<vmem>>, %arg6: memref<128x1xf32, #tpu.memory_space<vmem>>, %arg7: memref<128x1xf32, #tpu.memory_space<vmem>>, %arg8: memref<1x1xf32, #tpu.memory_space<vmem>>, %arg9: memref<1x128xf32, #tpu.memory_space<vmem>>) attributes {dimension_semantics = [#tpu.dimension_semantics<parallel>], iteration_bounds = array<i64: 1>, scalar_prefetch = 0 : i64, scratch_operands = 0 : i64, tpu.core_type = #tpu.core_type<tc>, window_params = [{transform_indices = @transform_0, window_bounds = array<i64: 8, 128>}, {pipeline_mode = #tpu.pipeline_mode<synchronous>, transform_indices = @transform_1, window_bounds = array<i64: 128, 8>}, {pipeline_mode = #tpu.pipeline_mode<synchronous>, transform_indices = @transform_2, window_bounds = array<i64: 128, 128>}, {pipeline_mode = #tpu.pipeline_mode<synchronous>, transform_indices = @transform_3, window_bounds = array<i64: 128, 1>}, {pipeline_mode = #tpu.pipeline_mode<synchronous>, transform_indices = @transform_4, window_bounds = array<i64: 128, 128>}, {pipeline_mode = #tpu.pipeline_mode<synchronous>, transform_indices = @transform_5, window_bounds = array<i64: 128, 1>}, {pipeline_mode = #tpu.pipeline_mode<synchronous>, transform_indices = @transform_6, window_bounds = array<i64: 128, 1>}, {pipeline_mode = #tpu.pipeline_mode<synchronous>, transform_indices = @transform_7, window_bounds = array<i64: 1, 1>}, {transform_indices = @transform_8, window_bounds = array<i64: 1, 128>}]} {
    %c0 = arith.constant 0 : index
    %c0_0 = arith.constant 0 : index
    %0 = vector.load %arg2[%c0, %c0_0] : memref<128x8xbf16, #tpu.memory_space<vmem>>, vector<128x8xbf16>
    %c0_1 = arith.constant 0 : index
    %c0_2 = arith.constant 0 : index
    %1 = vector.load %arg1[%c0_1, %c0_2] : memref<8x128xbf16, #tpu.memory_space<vmem>>, vector<8x128xbf16>
    %cst = arith.constant dense<0.000000e+00> : vector<128x128xf32>
    %2 = tpu.matmul %0, %1, %cst {dimension_numbers = #tpu.dot_dimension_numbers<[1], [0], [0], [1], [0, 0, 1, 1], [], []>} : vector<128x8xbf16>, vector<8x128xbf16>, vector<128x128xf32> -> vector<128x128xf32>
    %cst_3 = arith.constant 0.000000e+00 : f32
    %3 = vector.broadcast %cst_3 : f32 to vector<128x128xf32>
    %4 = arith.maximumf %2, %3 : vector<128x128xf32>
    %5 = arith.truncf %4 : vector<128x128xf32> to vector<128x128xbf16>
    %c0_4 = arith.constant 0 : index
    %c0_5 = arith.constant 0 : index
    %6 = vector.load %arg3[%c0_4, %c0_5] : memref<128x128xbf16, #tpu.memory_space<vmem>>, vector<128x128xbf16>
    %cst_6 = arith.constant dense<0.000000e+00> : vector<128x128xf32>
    %7 = tpu.matmul %6, %5, %cst_6 {dimension_numbers = #tpu.dot_dimension_numbers<[1], [0], [0], [1], [0, 0, 1, 1], [], []>} : vector<128x128xbf16>, vector<128x128xbf16>, vector<128x128xf32> -> vector<128x128xf32>
    %c0_7 = arith.constant 0 : index
    %c0_8 = arith.constant 0 : index
    %8 = vector.load %arg4[%c0_7, %c0_8] : memref<128x1xf32, #tpu.memory_space<vmem>>, vector<128x1xf32>
    %9 = vector.broadcast %8 : vector<128x1xf32> to vector<128x128xf32>
    %10 = arith.addf %7, %9 : vector<128x128xf32>
    %cst_9 = arith.constant 0.000000e+00 : f32
    %11 = vector.broadcast %cst_9 : f32 to vector<128x128xf32>
    %12 = arith.maximumf %10, %11 : vector<128x128xf32>
    %13 = arith.truncf %12 : vector<128x128xf32> to vector<128x128xbf16>
    %c0_10 = arith.constant 0 : index
    %c0_11 = arith.constant 0 : index
    %14 = vector.load %arg5[%c0_10, %c0_11] : memref<128x128xbf16, #tpu.memory_space<vmem>>, vector<128x128xbf16>
    %cst_12 = arith.constant dense<0.000000e+00> : vector<128x128xf32>
    %15 = tpu.matmul %14, %13, %cst_12 {dimension_numbers = #tpu.dot_dimension_numbers<[1], [0], [0], [1], [0, 0, 1, 1], [], []>} : vector<128x128xbf16>, vector<128x128xbf16>, vector<128x128xf32> -> vector<128x128xf32>
    %c0_13 = arith.constant 0 : index
    %c0_14 = arith.constant 0 : index
    %16 = vector.load %arg6[%c0_13, %c0_14] : memref<128x1xf32, #tpu.memory_space<vmem>>, vector<128x1xf32>
    %17 = vector.broadcast %16 : vector<128x1xf32> to vector<128x128xf32>
    %18 = arith.addf %15, %17 : vector<128x128xf32>
    %cst_15 = arith.constant 0.000000e+00 : f32
    %19 = vector.broadcast %cst_15 : f32 to vector<128x128xf32>
    %20 = arith.maximumf %18, %19 : vector<128x128xf32>
    %21 = arith.truncf %20 : vector<128x128xf32> to vector<128x128xbf16>
    %22 = arith.extf %21 : vector<128x128xbf16> to vector<128x128xf32>
    %c0_16 = arith.constant 0 : index
    %c0_17 = arith.constant 0 : index
    %23 = vector.load %arg7[%c0_16, %c0_17] : memref<128x1xf32, #tpu.memory_space<vmem>>, vector<128x1xf32>
    %24 = vector.broadcast %23 : vector<128x1xf32> to vector<128x128xf32>
    %25 = arith.mulf %22, %24 : vector<128x128xf32>
    %cst_18 = arith.constant dense<0.000000e+00> : vector<128xf32>
    %26 = vector.multi_reduction <add>, %25, %cst_18 [0] : vector<128x128xf32> to vector<128xf32>
    %27 = vector.shape_cast %26 : vector<128xf32> to vector<1x128xf32>
    %c0_19 = arith.constant 0 : index
    %c0_20 = arith.constant 0 : index
    %28 = vector.load %arg8[%c0_19, %c0_20] : memref<1x1xf32, #tpu.memory_space<vmem>>, vector<1x1xf32>
    %29 = vector.broadcast %28 : vector<1x1xf32> to vector<1x128xf32>
    %30 = arith.addf %27, %29 : vector<1x128xf32>
    %cst_21 = arith.constant 0.000000e+00 : f32
    %31 = vector.broadcast %cst_21 : f32 to vector<1x128xf32>
    %32 = arith.subf %31, %30 : vector<1x128xf32>
    %33 = math.exp %32 : vector<1x128xf32>
    %cst_22 = arith.constant 1.000000e+00 : f32
    %34 = vector.broadcast %cst_22 : f32 to vector<1x128xf32>
    %35 = arith.addf %34, %33 : vector<1x128xf32>
    %36 = tpu.reciprocal %35 {approx = true} : vector<1x128xf32> -> vector<1x128xf32>
    %c0_23 = arith.constant 0 : index
    %c0_24 = arith.constant 0 : index
    %37 = vector.load %arg9[%c0_23, %c0_24] : memref<1x128xf32, #tpu.memory_space<vmem>>, vector<1x128xf32>
    tpu.vector_store %arg9[%c0_23, %c0_24], %36 {strides = array<i32>} : memref<1x128xf32, #tpu.memory_space<vmem>>, vector<1x128xf32>,
    return
  }
  func.func @transform_0(%arg0: i32) -> (i32, i32) {
    %c0_i32 = arith.constant 0 : i32
    %c0_i32_0 = arith.constant 0 : i32
    return %c0_i32, %arg0 : i32, i32
  }
  func.func @transform_1(%arg0: i32) -> (i32, i32) {
    %c0_i32 = arith.constant 0 : i32
    %c0_i32_0 = arith.constant 0 : i32
    %c0_i32_1 = arith.constant 0 : i32
    return %c0_i32, %c0_i32_0 : i32, i32
  }
  func.func @transform_2(%arg0: i32) -> (i32, i32) {
    %c0_i32 = arith.constant 0 : i32
    %c0_i32_0 = arith.constant 0 : i32
    %c0_i32_1 = arith.constant 0 : i32
    return %c0_i32, %c0_i32_0 : i32, i32
  }
  func.func @transform_3(%arg0: i32) -> (i32, i32) {
    %c0_i32 = arith.constant 0 : i32
    %c0_i32_0 = arith.constant 0 : i32
    %c0_i32_1 = arith.constant 0 : i32
    return %c0_i32, %c0_i32_0 : i32, i32
  }
  func.func @transform_4(%arg0: i32) -> (i32, i32) {
    %c0_i32 = arith.constant 0 : i32
    %c0_i32_0 = arith.constant 0 : i32
    %c0_i32_1 = arith.constant 0 : i32
    return %c0_i32, %c0_i32_0 : i32, i32
  }
  func.func @transform_5(%arg0: i32) -> (i32, i32) {
    %c0_i32 = arith.constant 0 : i32
    %c0_i32_0 = arith.constant 0 : i32
    %c0_i32_1 = arith.constant 0 : i32
    return %c0_i32, %c0_i32_0 : i32, i32
  }
  func.func @transform_6(%arg0: i32) -> (i32, i32) {
    %c0_i32 = arith.constant 0 : i32
    %c0_i32_0 = arith.constant 0 : i32
    %c0_i32_1 = arith.constant 0 : i32
    return %c0_i32, %c0_i32_0 : i32, i32
  }
  func.func @transform_7(%arg0: i32) -> (i32, i32) {
    %c0_i32 = arith.constant 0 : i32
    %c0_i32_0 = arith.constant 0 : i32
    %c0_i32_1 = arith.constant 0 : i32
    return %c0_i32, %c0_i32_0 : i32, i32
  }
  func.func @transform_8(%arg0: i32) -> (i32, i32) {
    %c0_i32 = arith.constant 0 : i32
    %c0_i32_0 = arith.constant 0 : i32
    return %c0_i32, %arg0 : i32, i32
  }
}

</mosaic_0001>

<bundles_post_ra>
// kernel: tpu_custom_call.1
= control target key start
LH: loop header
LB: loop body
LE: loop exit
PB: predicated region body
PF: predicated region fallthrough
CT: control target
= control target key end

     0   :  { %s1486_s0 = inlined_call_operand.vmem [shape: bf16[8,128], index: 0, kind: input, shape index: {}]   ;;  %s1487_s1 = inlined_call_operand.vmem [shape: bf16[128,8], index: 1, kind: input, shape index: {}]   ;;  %s1488_s2 = inlined_call_operand.vmem [shape: bf16[128,128], index: 2, kind: input, shape index: {}]   ;;  %s1489_s3 = inlined_call_operand.vmem [shape: f32[128,1], index: 3, kind: input, shape index: {}]   ;;  %s1490_s4 = inlined_call_operand.vmem [shape: bf16[128,128], index: 4, kind: input, shape index: {}]   ;;  %s1491_s5 = inlined_call_operand.vmem [shape: f32[128,1], index: 5, kind: input, shape index: {}]   ;;  %s1492_s6 = inlined_call_operand.vmem [shape: f32[128,1], index: 6, kind: input, shape index: {}]   ;;  %s1493_s7 = inlined_call_operand.<no memory space> [shape: f32[1,1], index: 7, kind: input, shape index: {}]   ;;  %s1494_s8 = inlined_call_operand.hbm [shape: f32[1,128], index: 8, kind: output, shape index: {}]  }
   0x1   :  { %v13_v0 = vstv %s1493_s7 }
   0x2   :  { %14 = vst [vmem:[#allocation2] sm:$0x1] %v13_v0 }
   0x3   :  { %v49_v1 = vld [vmem:[%s1486_s0] sm:$0xf]  ;;  %vm115_vm0 = vcmask 1043456   ;;  %vm90_vm1 = vcmask 64512   ;;  %v1143_v4 = vld [vmem:[%s1487_s1 + $0x8] sm:$0xff]   ;;  %v1144_v5 = vld [vmem:[%s1487_s1 + $0x10] sm:$0xff]  }
   0x4   :  { %v1142_v2 = vld [vmem:[%s1487_s1] sm:$0xff]   ;;  %1137 = vmatprep.subr.msk.bf16.mxu0 %vm115_vm0, %v49_v1  ;;  %v117_v3 = vsel %vm115_vm0, %v49_v1, 0  ;;  %v1145_v6 = vld [vmem:[%s1487_s1 + $0x18] sm:$0xff]   ;;  %v1147_v8 = vld [vmem:[%s1487_s1 + $0x28] sm:$0xff]  }
   0x5   :  { %1056 = vmatpush3.bf16.msra.mxu0 %v117_v3  ;;  %1057 = vmatprep.mubr.msk.bf16.mxu0 %vm90_vm1, %v1142_v2  ;;  %v1146_v7 = vld [vmem:[%s1487_s1 + $0x20] sm:$0xff]   ;;  %v1148_v9 = vld [vmem:[%s1487_s1 + $0x30] sm:$0xff]  }
   0x8   :  { %1058 = vmatmul.mubr.msk.bf16.vlgmr.msra.gmra.mrb[0].mxu0 %vm90_vm1, %v1143_v4 }
   0x9   :  { %1061 = vmatprep.mubr.msk.bf16.mxu0 %vm90_vm1, %v1144_v5 }
  0x10   :  { %1062 = vmatmul.mubr.msk.bf16.gmra.mrb[4].mxu0 %vm90_vm1, %v1145_v6 }
  0x11   :  { %1065 = vmatprep.mubr.msk.bf16.mxu0 %vm90_vm1, %v1146_v7 }
  0x12   :  { %15 = vsyncpa [#allocation4], 0  ;;  %v1149_v10 = vld [vmem:[%s1487_s1 + $0x38] sm:$0xff]   ;;  %v1194_v11 = vmov 0   ;;  %v256_v12 = vld [vmem:[%s1489_s3] sm:$0xff] }
  0x13   :  { %1140 = vset.pattern.permute.xlu0 %v1194_v11  ;;  %1141 = vset.pattern.permute.xlu1 %v1194_v11  ;;  %v257_v13 = vld [vmem:[%s1489_s3 + $0x8] sm:$0xff]  ;;  %v258_v14 = vld [vmem:[%s1489_s3 + $0x10] sm:$0xff]  ;;  %v260_v15 = vld [vmem:[%s1489_s3 + $0x20] sm:$0xff] }
  0x14   :  { %274 = vperm.xlu0 %1140, %v256_v12   ;;  %284 = vperm.xlu1 %1141, %v258_v14   ;;  %v259_v16 = vld [vmem:[%s1489_s3 + $0x18] sm:$0xff]  ;;  %v262_v17 = vld [vmem:[%s1489_s3 + $0x30] sm:$0xff]  ;;  %v1150_v18 = vld [vmem:[%s1488_s2] sm:$0xff]  }
  0x15   :  { %1089 = vmatprep.mubr.bf16.mxu1 %v1150_v18  ;;  %v261_v19 = vld [vmem:[%s1489_s3 + $0x28] sm:$0xff]  ;;  %v264_v20 = vld [vmem:[%s1489_s3 + $0x40] sm:$0xff]  ;;  %v263_v21 = vld [vmem:[%s1489_s3 + $0x38] sm:$0xff] }
  0x16   :  { %v266_v22 = vld [vmem:[%s1489_s3 + $0x50] sm:$0xff]  ;;  %v265_v23 = vld [vmem:[%s1489_s3 + $0x48] sm:$0xff]  ;;  %v268_v24 = vld [vmem:[%s1489_s3 + $0x60] sm:$0xff] }
  0x17   :  { %v267_v25 = vld [vmem:[%s1489_s3 + $0x58] sm:$0xff]  ;;  %v270_v26 = vld [vmem:[%s1489_s3 + $0x70] sm:$0xff]  ;;  %v269_v27 = vld [vmem:[%s1489_s3 + $0x68] sm:$0xff] }
  0x18   :  { %1066 = vmatmul.mubr.msk.bf16.gmra.mrb[8].mxu0 %vm90_vm1, %v1147_v8  ;;  %279 = vperm.xlu0 %1140, %v257_v13   ;;  %v537_v28 = vld [vmem:[%s1491_s5] sm:$0xff]  ;;  %v271_v29 = vld [vmem:[%s1489_s3 + $0x78] sm:$0xff]  ;;  %v539_v30 = vld [vmem:[%s1491_s5 + $0x10] sm:$0xff] }
  0x19   :  { %1069 = vmatprep.mubr.msk.bf16.mxu0 %vm90_vm1, %v1148_v9  ;;  %289 = vperm.xlu1 %1141, %v259_v16   ;;  %v538_v31 = vld [vmem:[%s1491_s5 + $0x8] sm:$0xff]  ;;  %v541_v32 = vld [vmem:[%s1491_s5 + $0x20] sm:$0xff]  ;;  %v540_v33 = vld [vmem:[%s1491_s5 + $0x18] sm:$0xff] }
  0x1a   :  { %v818_v34 = vld [vmem:[%s1492_s6] sm:$0xff]  ;;  %v542_v35 = vld [vmem:[%s1491_s5 + $0x28] sm:$0xff]  ;;  %v543_v36 = vld [vmem:[%s1491_s5 + $0x30] sm:$0xff] }
  0x1b   :  { %v819_v37 = vld [vmem:[%s1492_s6 + $0x8] sm:$0xff]  ;;  %v820_v38 = vld [vmem:[%s1492_s6 + $0x10] sm:$0xff]  ;;  %v544_v39 = vld [vmem:[%s1491_s5 + $0x38] sm:$0xff] }
  0x1c   :  { %294 = vperm.xlu0 %1140, %v260_v15   ;;  %v545_v40 = vld [vmem:[%s1491_s5 + $0x40] sm:$0xff]  ;;  %v821_v41 = vld [vmem:[%s1492_s6 + $0x18] sm:$0xff]  ;;  %v546_v43 = vld [vmem:[%s1491_s5 + $0x48] sm:$0xff] }
  0x1d   :  { %299 = vperm.xlu1 %1141, %v261_v19   ;;  %v822_v42 = vld [vmem:[%s1492_s6 + $0x20] sm:$0xff]  ;;  %v547_v44 = vld [vmem:[%s1491_s5 + $0x50] sm:$0xff]  ;;  %v823_v45 = vld [vmem:[%s1492_s6 + $0x28] sm:$0xff] }
  0x1e   :  { %v824_v46 = vld [vmem:[%s1492_s6 + $0x30] sm:$0xff]  ;;  %v548_v47 = vld [vmem:[%s1491_s5 + $0x58] sm:$0xff]  ;;  %v549_v48 = vld [vmem:[%s1491_s5 + $0x60] sm:$0xff] }
  0x1f   :  { %v825_v49 = vld [vmem:[%s1492_s6 + $0x38] sm:$0xff]  ;;  %v826_v50 = vld [vmem:[%s1492_s6 + $0x40] sm:$0xff]  ;;  %v550_v51 = vld [vmem:[%s1491_s5 + $0x68] sm:$0xff] }
  0x20   :  { %1070 = vmatmul.mubr.msk.bf16.gmra.mrb[12].mxu0 %vm90_vm1, %v1149_v10  ;;  %304 = vperm.xlu0 %1140, %v262_v17   ;;  %v551_v52 = vld [vmem:[%s1491_s5 + $0x70] sm:$0xff]  ;;  %v827_v53 = vld [vmem:[%s1492_s6 + $0x48] sm:$0xff]  ;;  %v552_v55 = vld [vmem:[%s1491_s5 + $0x78] sm:$0xff] }
  0x21   :  { %309 = vperm.xlu1 %1141, %v263_v21   ;;  %v828_v54 = vld [vmem:[%s1492_s6 + $0x50] sm:$0xff]  ;;  %v830_v56 = vld [vmem:[%s1492_s6 + $0x60] sm:$0xff]  ;;  %v829_v57 = vld [vmem:[%s1492_s6 + $0x58] sm:$0xff] }
  0x22   :  { %v832_v58 = vld [vmem:[%s1492_s6 + $0x70] sm:$0xff]  ;;  %v831_v59 = vld [vmem:[%s1492_s6 + $0x68] sm:$0xff]  ;;  %v951_v60 = vld [vmem:[#allocation2] sm:$0x1] }
  0x23   :  { %v833_v61 = vld [vmem:[%s1492_s6 + $0x78] sm:$0xff] }
  0x24   :  { %314 = vperm.xlu0 %1140, %v264_v20  }
  0x25   :  { %319 = vperm.xlu1 %1141, %v265_v23  }
  0x28   :  { %324 = vperm.xlu0 %1140, %v266_v22  }
  0x29   :  { %329 = vperm.xlu1 %1141, %v267_v25  }
  0x2c   :  { %334 = vperm.xlu0 %1140, %v268_v24  }
  0x2d   :  { %339 = vperm.xlu1 %1141, %v269_v27  }
  0x30   :  { %344 = vperm.xlu0 %1140, %v270_v26  }
  0x31   :  { %349 = vperm.xlu1 %1141, %v271_v29  }
  0x34   :  { %555 = vperm.xlu0 %1140, %v537_v28  }
  0x35   :  { %560 = vperm.xlu1 %1141, %v538_v31  }
  0x38   :  { %565 = vperm.xlu0 %1140, %v539_v30  }
  0x39   :  { %570 = vperm.xlu1 %1141, %v540_v33  }
  0x3c   :  { %575 = vperm.xlu0 %1140, %v541_v32  }
  0x3d   :  { %580 = vperm.xlu1 %1141, %v542_v35  }
  0x40   :  { %836 = vperm.xlu0 %1140, %v818_v34  }
  0x41   :  { %841 = vperm.xlu1 %1141, %v819_v37  }
  0x44   :  { %585 = vperm.xlu0 %1140, %v543_v36  }
  0x45   :  { %590 = vperm.xlu1 %1141, %v544_v39   ;;  %v1152_v39 = vld [vmem:[%s1488_s2 + $0x10] sm:$0xff]  }
  0x48   :  { %846 = vperm.xlu0 %1140, %v820_v38   ;;  %v1151_v38 = vld [vmem:[%s1488_s2 + $0x8] sm:$0xff]  }
  0x49   :  { %851 = vperm.xlu1 %1141, %v821_v41   ;;  %v1154_v41 = vld [vmem:[%s1488_s2 + $0x20] sm:$0xff]  }
  0x4c   :  { %595 = vperm.xlu0 %1140, %v545_v40   ;;  %v1153_v40 = vld [vmem:[%s1488_s2 + $0x18] sm:$0xff]  }
  0x4d   :  { %600 = vperm.xlu1 %1141, %v546_v43   ;;  %v1156_v43 = vld [vmem:[%s1488_s2 + $0x30] sm:$0xff]  }
  0x50   :  { %856 = vperm.xlu0 %1140, %v822_v42   ;;  %v1155_v42 = vld [vmem:[%s1488_s2 + $0x28] sm:$0xff]  }
  0x51   :  { %861 = vperm.xlu1 %1141, %v823_v45   ;;  %v1158_v45 = vld [vmem:[%s1490_s4] sm:$0xff]  }
  0x52   :  { %1121 = vmatprep.mubr.bf16.mxu0 %v1158_v45 }
  0x54   :  { %605 = vperm.xlu0 %1140, %v547_v44   ;;  %v1157_v44 = vld [vmem:[%s1488_s2 + $0x38] sm:$0xff]  }
  0x55   :  { %610 = vperm.xlu1 %1141, %v548_v47  }
  0x58   :  { %866 = vperm.xlu0 %1140, %v824_v46  }
  0x59   :  { %871 = vperm.xlu1 %1141, %v825_v49  }
  0x5c   :  { %615 = vperm.xlu0 %1140, %v549_v48  }
  0x5d   :  { %620 = vperm.xlu1 %1141, %v550_v51  }
  0x60   :  { %876 = vperm.xlu0 %1140, %v826_v50  }
  0x61   :  { %881 = vperm.xlu1 %1141, %v827_v53  }
  0x64   :  { %625 = vperm.xlu0 %1140, %v551_v52  }
  0x65   :  { %630 = vperm.xlu1 %1141, %v552_v55  }
  0x68   :  { %886 = vperm.xlu0 %1140, %v828_v54  }
  0x69   :  { %891 = vperm.xlu1 %1141, %v829_v57  }
  0x6c   :  { %896 = vperm.xlu0 %1140, %v830_v56  }
  0x6d   :  { %901 = vperm.xlu1 %1141, %v831_v59  }
  0x70   :  { %906 = vperm.xlu0 %1140, %v832_v58  }
  0x71   :  { %911 = vperm.xlu1 %1141, %v833_v61  }
  0x74   :  { %954 = vperm.xlu0 %1140, %v951_v60  }
  0x93   :  { %v275_v46 = vpop.permute.xlu0 %274  ;;  %v285_v47 = vpop.permute.xlu1 %284 }
  0x97   :  { %v280_v48 = vpop.permute.xlu0 %279 }
  0x98   :  { %v290_v49 = vpop.permute.xlu1 %289 }
  0x9b   :  { %v295_v50 = vpop.permute.xlu0 %294 }
  0x9c   :  { %v300_v51 = vpop.permute.xlu1 %299 }
  0x9f   :  { %v305_v52 = vpop.permute.xlu0 %304 }
  0xa0   :  { %v310_v56 = vpop.permute.xlu1 %309 }
  0xdb   :  { %v1059_v62 = vpop.f32.mrb[0].mxu0 }
  0xdc   :  { %v153_v63 = vpop.f32.mrb[1].mxu0  ;;  %v218_v1 = vmax.f32 %v1059_v62, 0.0 }
  0xdd   :  { %v1060_v0 = vpop.f32.mrb[2].mxu0  ;;  %v216_v4 = vmax.f32 %v153_v63, 0.0 }
  0xde   :  { %v219_v2 = vmax.f32 %v1060_v0, 0.0  ;;  %v156_v3 = vpop.f32.mrb[3].mxu0  ;;  %v315_v0 = vpop.permute.xlu0 %314 }
  0xdf   :  { %v217_v5 = vmax.f32 %v156_v3, 0.0 }
  0xe0   :  { %v233_v6 = vpack.c.bf16 %v219_v2, %v218_v1 }
  0xe1   :  { %v232_v7 = vpack.c.bf16 %v217_v5, %v216_v4  ;;  %v320_v4 = vpop.permute.xlu1 %319 }
  0xe3   :  { %v1063_v8 = vpop.f32.mrb[4].mxu0  ;;  %1073 = vmatprep.subr.bf16.mxu1 %v232_v7 }
  0xe4   :  { %v169_v9 = vpop.f32.mrb[5].mxu0  ;;  %1074 = vmatpush3.bf16.msra.mxu1 %v232_v7  ;;  %v222_v11 = vmax.f32 %v1063_v8, 0.0 }
  0xe5   :  { %v1064_v10 = vpop.f32.mrb[6].mxu0  ;;  %1075 = vmatprep.subr.bf16.mxu1 %v233_v6  ;;  %v220_v14 = vmax.f32 %v169_v9, 0.0 }
  0xe6   :  { %v223_v12 = vmax.f32 %v1064_v10, 0.0  ;;  %v172_v13 = vpop.f32.mrb[7].mxu0 }
  0xe7   :  { %v221_v15 = vmax.f32 %v172_v13, 0.0  ;;  %v325_v13 = vpop.permute.xlu0 %324 }
  0xe8   :  { %v235_v16 = vpack.c.bf16 %v223_v12, %v222_v11  ;;  %1076 = vmatpush3.bf16.msra.mxu1 %v233_v6 }
  0xe9   :  { %v234_v17 = vpack.c.bf16 %v221_v15, %v220_v14 }
  0xeb   :  { %v1067_v18 = vpop.f32.mrb[8].mxu0  ;;  %1077 = vmatprep.subr.bf16.mxu1 %v234_v17 }
  0xec   :  { %v185_v19 = vpop.f32.mrb[9].mxu0  ;;  %1078 = vmatpush3.bf16.msra.mxu1 %v234_v17  ;;  %v226_v21 = vmax.f32 %v1067_v18, 0.0  ;;  %v330_v17 = vpop.permute.xlu1 %329 }
  0xed   :  { %v1068_v20 = vpop.f32.mrb[10].mxu0  ;;  %1079 = vmatprep.subr.bf16.mxu1 %v235_v16  ;;  %v224_v24 = vmax.f32 %v185_v19, 0.0 }
  0xee   :  { %v227_v22 = vmax.f32 %v1068_v20, 0.0  ;;  %v188_v23 = vpop.f32.mrb[11].mxu0 }
  0xef   :  { %v225_v25 = vmax.f32 %v188_v23, 0.0 }
  0xf0   :  { %v237_v26 = vpack.c.bf16 %v227_v22, %v226_v21  ;;  %1080 = vmatpush3.bf16.msra.mxu1 %v235_v16 }
  0xf1   :  { %v236_v27 = vpack.c.bf16 %v225_v25, %v224_v24  ;;  %v335_v25 = vpop.permute.xlu0 %334 }
  0xf3   :  { %v1071_v28 = vpop.f32.mrb[12].mxu0  ;;  %1081 = vmatprep.subr.bf16.mxu1 %v236_v27 }
  0xf4   :  { %v201_v29 = vpop.f32.mrb[13].mxu0  ;;  %1082 = vmatpush3.bf16.msra.mxu1 %v236_v27  ;;  %v230_v31 = vmax.f32 %v1071_v28, 0.0 }
  0xf5   :  { %v1072_v30 = vpop.f32.mrb[14].mxu0  ;;  %1083 = vmatprep.subr.bf16.mxu1 %v237_v26  ;;  %v228_v34 = vmax.f32 %v201_v29, 0.0 }
  0xf6   :  { %v231_v32 = vmax.f32 %v1072_v30, 0.0  ;;  %v204_v33 = vpop.f32.mrb[15].mxu0  ;;  %v340_v30 = vpop.permute.xlu1 %339 }
  0xf7   :  { %v229_v35 = vmax.f32 %v204_v33, 0.0 }
  0xf8   :  { %v239_v36 = vpack.c.bf16 %v231_v32, %v230_v31  ;;  %1084 = vmatpush3.bf16.msra.mxu1 %v237_v26 }
  0xf9   :  { %v238_v37 = vpack.c.bf16 %v229_v35, %v228_v34 }
  0xfb   :  { %1085 = vmatprep.subr.bf16.mxu1 %v238_v37 }
  0xfc   :  { %1086 = vmatpush3.bf16.msra.mxu1 %v238_v37  ;;  %v345_v37 = vpop.permute.xlu0 %344 }
  0xfd   :  { %1087 = vmatprep.subr.bf16.mxu1 %v239_v36 }
 0x100   :  { %1088 = vmatpush3.bf16.msra.mxu1 %v239_v36 }
 0x103   :  { %1090 = vmatmul.mubr.bf16.vlgmr.msra.gmra.mrb[0].mxu1 %v1151_v38 }
 0x104   :  { %1093 = vmatprep.mubr.bf16.mxu1 %v1152_v39 }
 0x10b   :  { %1094 = vmatmul.mubr.bf16.gmra.mrb[4].mxu1 %v1153_v40 }
 0x10c   :  { %1097 = vmatprep.mubr.bf16.mxu1 %v1154_v41 }
 0x113   :  { %1098 = vmatmul.mubr.bf16.gmra.mrb[8].mxu1 %v1155_v42  ;;  %v350_v42 = vpop.permute.xlu1 %349 }
 0x114   :  { %1101 = vmatprep.mubr.bf16.mxu1 %v1156_v43 }
 0x11b   :  { %1102 = vmatmul.mubr.bf16.gmra.mrb[12].mxu1 %v1157_v44 }
 0x1d6   :  { %v1091_v53 = vpop.f32.mrb[0].mxu1 }
 0x1d7   :  { %v443_v54 = vadd.f32 %v1091_v53, %v285_v47  ;;  %v434_v55 = vpop.f32.mrb[1].mxu1 }
 0x1d8   :  { %v435_v57 = vadd.f32 %v434_v55, %v275_v46  ;;  %v1092_v58 = vpop.f32.mrb[2].mxu1  ;;  %v1160_v55 = vld [vmem:[%s1490_s4 + $0x10] sm:$0xff]  }
 0x1d9   :  { %v446_v59 = vadd.f32 %v1092_v58, %v290_v49  ;;  %v437_v60 = vpop.f32.mrb[3].mxu1  ;;  %v499_v62 = vmax.f32 %v443_v54, 0.0  ;;  %v1159_v54 = vld [vmem:[%s1490_s4 + $0x8] sm:$0xff]  }
 0x1da   :  { %v438_v61 = vadd.f32 %v437_v60, %v280_v48  ;;  %v497_v1 = vmax.f32 %v435_v57, 0.0  ;;  %v1162_v57 = vld [vmem:[%s1490_s4 + $0x20] sm:$0xff]   ;;  %v1163_v58 = vld [vmem:[%s1490_s4 + $0x28] sm:$0xff]   ;;  %v1165_v60 = vld [vmem:[%s1490_s4 + $0x38] sm:$0xff]  }
 0x1db   :  { %v500_v63 = vmax.f32 %v446_v59, 0.0  ;;  %v1164_v59 = vld [vmem:[%s1490_s4 + $0x30] sm:$0xff]  }
 0x1dc   :  { %v498_v2 = vmax.f32 %v438_v61, 0.0  ;;  %v556_v61 = vpop.permute.xlu0 %555 }
 0x1dd   :  { %v514_v3 = vpack.c.bf16 %v500_v63, %v499_v62  ;;  %v561_v62 = vpop.permute.xlu1 %560 }
 0x1de   :  { %v513_v5 = vpack.c.bf16 %v498_v2, %v497_v1  ;;  %v1095_v6 = vpop.f32.mrb[4].mxu1 }
 0x1df   :  { %v459_v7 = vadd.f32 %v1095_v6, %v305_v52  ;;  %v450_v8 = vpop.f32.mrb[5].mxu1 }
 0x1e0   :  { %v451_v9 = vadd.f32 %v450_v8, %v295_v50  ;;  %v1096_v10 = vpop.f32.mrb[6].mxu1  ;;  %1105 = vmatprep.subr.bf16.mxu0 %v513_v5  ;;  %v566_v63 = vpop.permute.xlu0 %565 }
 0x1e1   :  { %v462_v11 = vadd.f32 %v1096_v10, %v310_v56  ;;  %v453_v12 = vpop.f32.mrb[7].mxu1  ;;  %1106 = vmatpush3.bf16.msra.mxu0 %v513_v5  ;;  %v503_v15 = vmax.f32 %v459_v7, 0.0  ;;  %v1161_v56 = vld [vmem:[%s1490_s4 + $0x18] sm:$0xff]   ;;  %s1195_s4 = smov [#allocation3]  }
 0x1e2   :  { %v454_v14 = vadd.f32 %v453_v12, %v300_v51  ;;  %1107 = vmatprep.subr.bf16.mxu0 %v514_v3  ;;  %v501_v18 = vmax.f32 %v451_v9, 0.0  ;;  %s974_s17 = sshll.u32 %s1195_s4, 4  ;;  %s975_s17 = int_to_ptr.vmem [resolvable:$true] %s974_s17 }
 0x1e3   :  { %v504_v16 = vmax.f32 %v462_v11, 0.0  ;;  %s1170_s18 = scalar_lea.vmem %s975_s17, 16  ;;  %s1174_s19 = scalar_lea.vmem %s975_s17, 32 }
 0x1e4   :  { %v502_v19 = vmax.f32 %v454_v14, 0.0  ;;  %v576_v1 = vpop.permute.xlu0 %575  ;;  %p1171_p0 = scmp.ne.s32.totalorder %s975_s17, %s1170_s18  ;;  %p1175_p1 = scmp.lt.s32.totalorder %s975_s17, %s975_s17 }
 0x1e5   :  { %v516_v20 = vpack.c.bf16 %v504_v16, %v503_v15  ;;  %1108 = vmatpush3.bf16.msra.mxu0 %v514_v3  ;;  %p1176_p2 = scmp.lt.s32.totalorder %s1174_s19, %s1170_s18 }
 0x1e6   :  { %v515_v21 = vpack.c.bf16 %v502_v19, %v501_v18  ;;  %v1099_v22 = vpop.f32.mrb[8].mxu1 }
 0x1e7   :  { %v475_v23 = vadd.f32 %v1099_v22, %v325_v13  ;;  %v466_v24 = vpop.f32.mrb[9].mxu1  ;;  %p1177_p3 = por %p1176_p2, %p1175_p1 }
 0x1e8   :  { %v467_v26 = vadd.f32 %v466_v24, %v315_v0  ;;  %v1100_v27 = vpop.f32.mrb[10].mxu1  ;;  %1109 = vmatprep.subr.bf16.mxu0 %v515_v21  ;;  %v571_v0 = vpop.permute.xlu1 %570 }
 0x1e9   :  { %v478_v28 = vadd.f32 %v1100_v27, %v330_v17  ;;  %v469_v29 = vpop.f32.mrb[11].mxu1  ;;  %1110 = vmatpush3.bf16.msra.mxu0 %v515_v21  ;;  %v507_v32 = vmax.f32 %v475_v23, 0.0  ;;  %v837_v3 = vpop.permute.xlu0 %836  ;;  %p1178_p4 = pnand %p1177_p3, %p1171_p0 }
 0x1ea   :  { %v470_v31 = vadd.f32 %v469_v29, %v320_v4  ;;  %1111 = vmatprep.subr.bf16.mxu0 %v516_v20  ;;  %v505_v34 = vmax.f32 %v467_v26, 0.0 }
 0x1eb   :  { %v508_v33 = vmax.f32 %v478_v28, 0.0 }
 0x1ec   :  { %v506_v35 = vmax.f32 %v470_v31, 0.0  ;;  %v581_v2 = vpop.permute.xlu1 %580 }
 0x1ed   :  { %v518_v36 = vpack.c.bf16 %v508_v33, %v507_v32  ;;  %1112 = vmatpush3.bf16.msra.mxu0 %v516_v20  ;;  %v586_v5 = vpop.permute.xlu0 %585 }
 0x1ee   :  { %v517_v38 = vpack.c.bf16 %v506_v35, %v505_v34  ;;  %v1103_v39 = vpop.f32.mrb[12].mxu1 }
 0x1ef   :  { %v491_v40 = vadd.f32 %v1103_v39, %v345_v37  ;;  %v482_v41 = vpop.f32.mrb[13].mxu1 }
 0x1f0   :  { %v483_v43 = vadd.f32 %v482_v41, %v335_v25  ;;  %v1104_v44 = vpop.f32.mrb[14].mxu1  ;;  %1113 = vmatprep.subr.bf16.mxu0 %v517_v38  ;;  %v842_v4 = vpop.permute.xlu1 %841 }
 0x1f1   :  { %v494_v45 = vadd.f32 %v1104_v44, %v350_v42  ;;  %v485_v46 = vpop.f32.mrb[15].mxu1  ;;  %1114 = vmatpush3.bf16.msra.mxu0 %v517_v38  ;;  %v511_v48 = vmax.f32 %v491_v40, 0.0  ;;  %v847_v7 = vpop.permute.xlu0 %846 }
 0x1f2   :  { %v486_v47 = vadd.f32 %v485_v46, %v340_v30  ;;  %1115 = vmatprep.subr.bf16.mxu0 %v518_v36  ;;  %v509_v50 = vmax.f32 %v483_v43, 0.0 }
 0x1f3   :  { %v512_v49 = vmax.f32 %v494_v45, 0.0 }
 0x1f4   :  { %v510_v51 = vmax.f32 %v486_v47, 0.0  ;;  %v591_v6 = vpop.permute.xlu1 %590 }
 0x1f5   :  { %v520_v52 = vpack.c.bf16 %v512_v49, %v511_v48  ;;  %1116 = vmatpush3.bf16.msra.mxu0 %v518_v36  ;;  %v596_v9 = vpop.permute.xlu0 %595 }
 0x1f6   :  { %v519_v53 = vpack.c.bf16 %v510_v51, %v509_v50 }
 0x1f8   :  { %1117 = vmatprep.subr.bf16.mxu0 %v519_v53  ;;  %v852_v8 = vpop.permute.xlu1 %851 }
 0x1f9   :  { %1118 = vmatpush3.bf16.msra.mxu0 %v519_v53  ;;  %v857_v11 = vpop.permute.xlu0 %856 }
 0x1fa   :  { %1119 = vmatprep.subr.bf16.mxu0 %v520_v52 }
 0x1fc   :  { %v601_v10 = vpop.permute.xlu1 %600 }
 0x1fd   :  { %1120 = vmatpush3.bf16.msra.mxu0 %v520_v52  ;;  %v606_v13 = vpop.permute.xlu0 %605 }
 0x200   :  { %1122 = vmatmul.mubr.bf16.vlgmr.msra.gmra.mrb[16].mxu0 %v1159_v54  ;;  %v1471_v12 = vpop.permute.xlu1 %861 }
 0x201   :  { %1125 = vmatprep.mubr.bf16.mxu0 %v1160_v55  ;;  %v867_v22 = vpop.permute.xlu0 %866 }
 0x204   :  { %v611_v14 = vpop.permute.xlu1 %610 }
 0x205   :  { %v616_v34 = vpop.permute.xlu0 %615 }
 0x208   :  { %1126 = vmatmul.mubr.bf16.gmra.mrb[20].mxu0 %v1161_v56  ;;  %v872_v26 = vpop.permute.xlu1 %871 }
 0x209   :  { %1129 = vmatprep.mubr.bf16.mxu0 %v1162_v57  ;;  %v877_v54 = vpop.permute.xlu0 %876 }
 0x20c   :  { %v621_v42 = vpop.permute.xlu1 %620 }
 0x210   :  { %1130 = vmatmul.mubr.bf16.gmra.mrb[24].mxu0 %v1163_v58 }
 0x211   :  { %1133 = vmatprep.mubr.bf16.mxu0 %v1164_v59 }
 0x218   :  { %1134 = vmatmul.mubr.bf16.gmra.mrb[28].mxu0 %v1165_v60 }
 0x2d3   :  { %v1123_v15 = vpop.f32.mrb[16].mxu0 }
 0x2d4   :  { %v724_v16 = vadd.f32 %v1123_v15, %v566_v63  ;;  %v715_v17 = vpop.f32.mrb[17].mxu0 }
 0x2d5   :  { %v716_v18 = vadd.f32 %v715_v17, %v556_v61  ;;  %v1124_v19 = vpop.f32.mrb[18].mxu0  ;;  %v882_v61 = vpop.permute.xlu1 %881 }
 0x2d6   :  { %v727_v20 = vadd.f32 %v1124_v19, %v571_v0  ;;  %v718_v21 = vpop.f32.mrb[19].mxu0  ;;  %v780_v24 = vmax.f32 %v724_v16, 0.0 }
 0x2d7   :  { %v719_v23 = vadd.f32 %v718_v21, %v561_v62  ;;  %v778_v27 = vmax.f32 %v716_v18, 0.0 }
 0x2d8   :  { %v781_v25 = vmax.f32 %v727_v20, 0.0 }
 0x2d9   :  { %v779_v28 = vmax.f32 %v719_v23, 0.0  ;;  %v631_v23 = vpop.permute.xlu1 %630 }
 0x2da   :  { %v795_v29 = vpack.c.bf16 %v781_v25, %v780_v24 }
 0x2db   :  { %v794_v30 = vpack.c.bf16 %v779_v28, %v778_v27  ;;  %v1127_v31 = vpop.f32.mrb[20].mxu0 }
 0x2dc   :  { %v740_v32 = vadd.f32 %v1127_v31, %v586_v5  ;;  %v731_v33 = vpop.f32.mrb[21].mxu0  ;;  %v804_v35 = vunpack.c.l.bf16 %v795_v29  ;;  %v805_v43 = vunpack.c.h.bf16 %v795_v29 }
 0x2dd   :  { %v802_v36 = vunpack.c.l.bf16 %v794_v30  ;;  %v803_v37 = vunpack.c.h.bf16 %v794_v30  ;;  %v732_v38 = vadd.f32 %v731_v33, %v576_v1  ;;  %v1128_v39 = vpop.f32.mrb[22].mxu0 }
 0x2de   :  { %v743_v40 = vadd.f32 %v1128_v39, %v591_v6  ;;  %v734_v41 = vpop.f32.mrb[23].mxu0  ;;  %v784_v47 = vmax.f32 %v740_v32, 0.0  ;;  %v916_v49 = vmul.f32 %v847_v7, %v804_v35  ;;  %v917_v55 = vmul.f32 %v852_v8, %v805_v43  ;;  %v626_v8 = vpop.permute.xlu0 %625 }
 0x2df   :  { %v914_v44 = vmul.f32 %v837_v3, %v802_v36  ;;  %v915_v45 = vmul.f32 %v842_v4, %v803_v37  ;;  %v735_v46 = vadd.f32 %v734_v41, %v581_v2  ;;  %v782_v51 = vmax.f32 %v732_v38, 0.0  ;;  %v892_v41 = vpop.permute.xlu1 %891 }
 0x2e0   :  { %v785_v48 = vmax.f32 %v743_v40, 0.0 }
 0x2e1   :  { %v930_v50 = vadd.f32 %v915_v45, %v914_v44  ;;  %v783_v52 = vmax.f32 %v735_v46, 0.0 }
 0x2e2   :  { %v797_v53 = vpack.c.bf16 %v785_v48, %v784_v47 }
 0x2e3   :  { %v931_v56 = vadd.f32 %v930_v50, %v916_v49  ;;  %v796_v57 = vpack.c.bf16 %v783_v52, %v782_v51  ;;  %v1131_v58 = vpop.f32.mrb[24].mxu0 }
 0x2e4   :  { %v756_v59 = vadd.f32 %v1131_v58, %v606_v13  ;;  %v747_v60 = vpop.f32.mrb[25].mxu0  ;;  %v808_v5 = vunpack.c.l.bf16 %v797_v53  ;;  %v809_v15 = vunpack.c.h.bf16 %v797_v53 }
 0x2e5   :  { %v806_v62 = vunpack.c.l.bf16 %v796_v57  ;;  %v807_v63 = vunpack.c.h.bf16 %v796_v57  ;;  %v932_v0 = vadd.f32 %v931_v56, %v917_v55  ;;  %v748_v1 = vadd.f32 %v747_v60, %v596_v9  ;;  %v1132_v2 = vpop.f32.mrb[26].mxu0 }
 0x2e6   :  { %v759_v3 = vadd.f32 %v1132_v2, %v611_v14  ;;  %v750_v4 = vpop.f32.mrb[27].mxu0  ;;  %v788_v16 = vmax.f32 %v756_v59, 0.0  ;;  %v920_v24 = vmul.f32 %v867_v22, %v808_v5  ;;  %v921_v29 = vmul.f32 %v872_v26, %v809_v15 }
 0x2e7   :  { %v918_v6 = vmul.f32 %v857_v11, %v806_v62  ;;  %v751_v7 = vadd.f32 %v750_v4, %v601_v10  ;;  %v919_v18 = vmul.f32 %v1471_v12, %v807_v63  ;;  %v786_v13 = vmax.f32 %v748_v1, 0.0  ;;  %v887_v12 = vpop.permute.xlu0 %886 }
 0x2e8   :  { %v789_v17 = vmax.f32 %v759_v3, 0.0  ;;  %v957_v3 = vlaneseq }
 0x2e9   :  { %v933_v19 = vadd.f32 %v932_v0, %v918_v6  ;;  %v787_v20 = vmax.f32 %v751_v7, 0.0 }
 0x2ea   :  { %v799_v21 = vpack.c.bf16 %v789_v17, %v788_v16  ;;  %v958_v6 = vshrl.u32 %v957_v3, 7 }
 0x2eb   :  { %v934_v25 = vadd.f32 %v933_v19, %v919_v18  ;;  %v798_v9 = vpack.c.bf16 %v787_v20, %v786_v13  ;;  %v1135_v27 = vpop.f32.mrb[28].mxu0 }
 0x2ec   :  { %v772_v14 = vadd.f32 %v1135_v27, %v626_v8  ;;  %v763_v28 = vpop.f32.mrb[29].mxu0  ;;  %v812_v36 = vunpack.c.l.bf16 %v799_v21  ;;  %v813_v43 = vunpack.c.h.bf16 %v799_v21  ;;  %v959_v16 = vsub.s32 0, %v958_v6 }
 0x2ed   :  { %v935_v11 = vadd.f32 %v934_v25, %v920_v24  ;;  %v810_v10 = vunpack.c.l.bf16 %v798_v9  ;;  %v811_v30 = vunpack.c.h.bf16 %v798_v9  ;;  %v1136_v31 = vpop.f32.mrb[30].mxu0  ;;  %v764_v32 = vadd.f32 %v763_v28, %v616_v34  ;;  %v897_v34 = vpop.permute.xlu0 %896 }
 0x2ee   :  { %v775_v33 = vadd.f32 %v1136_v31, %v631_v23  ;;  %v766_v35 = vpop.f32.mrb[31].mxu0  ;;  %v792_v39 = vmax.f32 %v772_v14, 0.0  ;;  %v924_v48 = vmul.f32 %v887_v12, %v812_v36  ;;  %v925_v51 = vmul.f32 %v892_v41, %v813_v43 }
 0x2ef   :  { %v922_v37 = vmul.f32 %v877_v54, %v810_v10  ;;  %v936_v38 = vadd.f32 %v935_v11, %v921_v29  ;;  %v767_v22 = vadd.f32 %v766_v35, %v621_v42  ;;  %v923_v44 = vmul.f32 %v882_v61, %v811_v30  ;;  %v902_v54 = vpop.permute.xlu1 %901 }
 0x2f0   :  { %v793_v40 = vmax.f32 %v775_v33, 0.0  ;;  %v790_v46 = vmax.f32 %v764_v32, 0.0 }
 0x2f1   :  { %v937_v45 = vadd.f32 %v936_v38, %v922_v37  ;;  %v791_v47 = vmax.f32 %v767_v22, 0.0  ;;  %v907_v61 = vpop.permute.xlu0 %906 }
 0x2f2   :  { %v801_v26 = vpack.c.bf16 %v793_v40, %v792_v39 }
 0x2f3   :  { %v938_v49 = vadd.f32 %v937_v45, %v923_v44  ;;  %v800_v50 = vpack.c.bf16 %v791_v47, %v790_v46  ;;  %v912_v0 = vpop.permute.xlu1 %911 }
 0x2f4   :  { %v816_v57 = vunpack.c.l.bf16 %v801_v26  ;;  %v817_v42 = vunpack.c.h.bf16 %v801_v26 }
 0x2f5   :  { %v939_v52 = vadd.f32 %v938_v49, %v924_v48  ;;  %v814_v53 = vunpack.c.l.bf16 %v800_v50  ;;  %v815_v55 = vunpack.c.h.bf16 %v800_v50  ;;  %v955_v8 = vpop.permute.xlu0 %954 }
 0x2f6   :  { %v928_v62 = vmul.f32 %v907_v61, %v816_v57  ;;  %v929_v1 = vmul.f32 %v912_v0, %v817_v42  ;;  %v960_v19 = vrot.slane %v955_v8, %v959_v16 }
 0x2f7   :  { %v940_v56 = vadd.f32 %v939_v52, %v925_v51  ;;  %v926_v58 = vmul.f32 %v897_v34, %v814_v53  ;;  %v927_v59 = vmul.f32 %v902_v54, %v815_v55 }
 0x2f9   :  { %v941_v60 = vadd.f32 %v940_v56, %v926_v58 }
 0x2fb   :  { %v942_v63 = vadd.f32 %v941_v60, %v927_v59 }
 0x2fd   :  { %v943_v2 = vadd.f32 %v942_v63, %v928_v62 }
 0x2ff   :  { %v944_v4 = vadd.f32 %v943_v2, %v929_v1 }
 0x301   :  { %v945_v5 = vrot.slane %v944_v4, 4 }
 0x303   :  { %v946_v7 = vadd.f32 %v945_v5, %v944_v4 }
 0x305   :  { %v947_v15 = vrot.slane %v946_v7, 2 }
 0x307   :  { %v948_v17 = vadd.f32 %v947_v15, %v946_v7 }
 0x309   :  { %v949_v18 = vrot.slane %v948_v17, 1 }
 0x30b   :  { %v950_v13 = vadd.f32 %v949_v18, %v948_v17 }
 0x30d   :  { %v961_v20 = vadd.f32 %v960_v19, %v950_v13 }
 0x30f   :  { %v962_v21 = vsub.f32 0.0, %v961_v20 }
 0x311   :  { %v963_v23 = vmul.f32 1.442695, %v962_v21 }
 0x313   :  { %1166 = vpow2.f32 %v963_v23 }
 0x31d   :  { %v1167_v24 = vpop.eup %1166 }
 0x31e   :  { %v965_v25 = vadd.f32 1.0, %v1167_v24 }
 0x320   :  { %1168 = vrcp.f32 %v965_v25 }
 0x32a   :  { %v1169_v9 = vpop.eup %1168 }
 0x32b   :  { %967 = vst [vmem:[#allocation3] sm:$0x1] %v1169_v9 }
 0x32c   :  { %1181 = shalt.err (!%p1178_p4)
}
 0x32d   :  { %s1182_s22 = scalar_lea.hbm %s1494_s8, 16 }
 0x32e   :  { %p1183_p5 = scmp.ne.s32.totalorder %s1494_s8, %s1182_s22  ;;  %p1186_p6 = scmp.lt.u32.totalorder %s1182_s22, %s1494_s8 }
 0x330   :  { %p1188_p7 = pnand %p1186_p6, %p1183_p5 }
 0x332   :  { %1191 = shalt.err (!%p1188_p7)
}
 0x333   :  { %977 = dma.vmem_to_hbm [thread:$0]  %s975_s17, 16, %s1494_s8, [#allocation4]  }
 0x334   :  { %1192 = dma.done.wait [#allocation4], 16  }
 0x335   :  { %1193 = vsyncadd [#allocation4], 4294967280 }
 0x336   :  { %981 = vsyncpa [#allocation4], 1 }

</bundles_post_ra>
